<compile_context>
chip_gen: v7x
topology: tpu7x:2x2x1
jax: 0.10.0
libtpu: 0.0.40
codegen_flags: <defaults>
</compile_context>

<pallas_src>
import functools

import jax
import jax.numpy as jnp
from jax import lax
from jax.experimental import pallas as pl
from jax.experimental.pallas import tpu as pltpu

EPS = 1e-8
NEG_SLOPE = 0.01  # PyTorch LeakyReLU default


def _leaky_relu(x):
    return jnp.where(x > 0, x, NEG_SLOPE * x)


def _round_up(x, m):
    return ((x + m - 1) // m) * m


def _mi_price_kernel(xu_ref, xl_ref, w1t_ref, b1_ref, w2t_ref, b2_ref,
                     w3t_ref, b3_ref, theta_ref, out_ref, *,
                     l1, num_groups, tile_b, batch):
    # Streamed blocks (feature-major: the batch lives on the 128-lane axis).
    xu = xu_ref[...]                                    # [ud_pad, tile_b] (f32 or bf16)
    xl = xl_ref[...]                                    # [l1+1,  tile_b] f32 = [loc | 1 | price]

    # ---- user_net MLP on the MXU: h = W^T @ x, every intermediate lane-dense ----
    h1 = jnp.dot(w1t_ref[...], xu, preferred_element_type=jnp.float32) + b1_ref[...]
    h1 = _leaky_relu(h1)                                # [H1, tile_b]
    h2 = jnp.dot(w2t_ref[...], h1, preferred_element_type=jnp.float32) + b2_ref[...]
    h2 = _leaky_relu(h2)                                # [H2, tile_b]
    logits = jnp.dot(w3t_ref[...], h2, preferred_element_type=jnp.float32) + b3_ref[...]
    # sigmoid is strictly monotonic -> argmax(sigmoid(z)) == argmax(z); skip it.

    # ---- all K candidate regressions in one MXU matmul (price column of theta = 0) ----
    regs = jnp.dot(theta_ref[...], xl, preferred_element_type=jnp.float32)   # [2K, tile_b]
    price = xl[l1:l1 + 1, :]                            # [1, tile_b]

    # ---- first-max-wins argmax over K rows fused with the theta gather (pure VPU) ----
    rows = [logits[k:k + 1, :] for k in range(num_groups)]
    m = rows[0]
    for k in range(1, num_groups):
        m = jnp.maximum(m, rows[k])
    remaining = jnp.ones_like(m)
    mu = jnp.zeros_like(m)
    delta_raw = jnp.zeros_like(m)
    for k in range(num_groups):
        hit = jnp.where((rows[k] == m) & (remaining > 0), 1.0, 0.0)
        remaining = remaining - hit
        mu = mu + hit * regs[k:k + 1, :]
        delta_raw = delta_raw + hit * regs[num_groups + k:num_groups + k + 1, :]

    # ---- Gaussian-NLL tail on [1, tile_b] lane-dense rows ----
    delta = jnp.abs(delta_raw) + EPS
    ln_delta = jnp.log(delta)
    diff = mu - price
    sq = diff * diff * 0.5 / (delta * delta)            # single exact divide

    # mask batch-padding lanes, emit one scalar partial per tile (loss only needs the sum)
    lane = pl.program_id(0) * tile_b + lax.broadcasted_iota(jnp.int32, (1, tile_b), 1)
    valid = (lane < batch).astype(jnp.float32)
    partial = jnp.sum((ln_delta - sq) * valid)
    out_ref[...] = jnp.full((8, 128), partial, dtype=jnp.float32)


def mi_price_likelihood_v2_forward(feat_user, feat_loc, feat_price, params, *,
                                   tile_b=2048, use_bf16=False):
    """params: dict with w1,b1,w2,b2,w3,b3 (weights as [in,out]) and theta [K,2,L+1]."""
    batch, user_dim = feat_user.shape
    loc_dim = feat_loc.shape[1]
    l1 = loc_dim + 1
    h1dim = params["w1"].shape[1]
    h2dim = params["w2"].shape[1]
    num_groups = params["w3"].shape[1]

    # lane-tile sizing: multiple of 128; big batches always split into >= 2 grid steps
    # so the "parallel" grid axis can be sharded across both v7x TensorCores.
    tile_b = max(128, _round_up(min(tile_b, _round_up(batch, 128)), 128))
    if batch > 128 and _round_up(batch, tile_b) // tile_b < 2:
        tile_b = _round_up((batch + 1) // 2, 128)
    b_pad = _round_up(batch, tile_b)
    num_tiles = b_pad // tile_b

    # feature-major packing: user features (bf16-able) + f32 [loc | 1 | price] tail.
    ud_pad = _round_up(user_dim, 16 if use_bf16 else 8)
    xu = jnp.pad(feat_user.astype(jnp.float32).T,
                 ((0, ud_pad - user_dim), (0, b_pad - batch)))          # [ud_pad, b_pad]
    tail = jnp.concatenate(
        [feat_loc.astype(jnp.float32),
         jnp.ones((batch, 1), jnp.float32),
         feat_price.astype(jnp.float32)], axis=1).T                     # [l1+1, batch]
    if b_pad != batch:
        tail = jnp.pad(tail, ((0, 0), (0, b_pad - batch)))

    w1t = jnp.pad(params["w1"].astype(jnp.float32).T,
                  ((0, 0), (0, ud_pad - user_dim)))                     # [H1, ud_pad]
    if use_bf16:
        xu = xu.astype(jnp.bfloat16)
        w1t = w1t.astype(jnp.bfloat16)
    w2t = params["w2"].astype(jnp.float32).T                            # [H2, H1]
    w3t = params["w3"].astype(jnp.float32).T                            # [K, H2]
    b1c = params["b1"].reshape(-1, 1).astype(jnp.float32)
    b2c = params["b2"].reshape(-1, 1).astype(jnp.float32)
    b3c = params["b3"].reshape(-1, 1).astype(jnp.float32)
    # [2K, l1+1]: rows 0..K-1 = mu coefs, rows K..2K-1 = delta coefs; price column = 0.
    w_theta = jnp.concatenate(
        [params["theta"][:, 0, :], params["theta"][:, 1, :]], axis=0).astype(jnp.float32)
    w_theta = jnp.pad(w_theta, ((0, 0), (0, 1)))

    kernel = functools.partial(_mi_price_kernel, l1=l1, num_groups=num_groups,
                               tile_b=tile_b, batch=batch)

    resident = lambda shape: pl.BlockSpec(shape, lambda i: (0, 0))

    in_bytes = xu.size * xu.dtype.itemsize + tail.size * 4
    w_bytes = 4 * (w1t.size + w2t.size + w3t.size + b1c.size + b2c.size
                   + b3c.size + w_theta.size)
    flops = 2 * b_pad * (ud_pad * h1dim + h1dim * h2dim + h2dim * num_groups
                         + (l1 + 1) * 2 * num_groups) + 16 * b_pad
    cost = pl.CostEstimate(
        flops=int(flops),
        transcendentals=int(2 * b_pad),
        bytes_accessed=int(in_bytes + w_bytes + num_tiles * 8 * 128 * 4))

    out = pl.pallas_call(
        kernel,
        out_shape=jax.ShapeDtypeStruct((num_tiles * 8, 128), jnp.float32),
        grid=(num_tiles,),
        in_specs=[
            pl.BlockSpec((ud_pad, tile_b), lambda i: (0, i)),    # streamed user features
            pl.BlockSpec((l1 + 1, tile_b), lambda i: (0, i)),    # streamed [loc | 1 | price]
            resident((h1dim, ud_pad)),                           # w1^T (zero-padded cols)
            resident((h1dim, 1)),                                # b1
            resident((h2dim, h1dim)),                            # w2^T
            resident((h2dim, 1)),                                # b2
            resident((num_groups, h2dim)),                       # w3^T
            resident((num_groups, 1)),                           # b3
            resident((2 * num_groups, l1 + 1)),                  # theta (mu|delta rows)
        ],
        out_specs=pl.BlockSpec((8, 128), lambda i: (i, 0)),
        compiler_params=pltpu.CompilerParams(
            dimension_semantics=("parallel",),
            vmem_limit_bytes=32 * 1024 * 1024),
        cost_estimate=cost,
    )(xu, tail, w1t, b1c, w2t, b2c, w3t, b3c, w_theta)

    partials = out.reshape(num_tiles, 8, 128)[:, 0, 0]
    loss = jnp.sum(partials) / batch
    return -loss


def reference_forward(feat_user, feat_loc, feat_price, params):
    """Pure-JAX replica of the PyTorch module for verification."""
    batch = feat_user.shape[0]
    h1 = _leaky_relu(feat_user @ params["w1"] + params["b1"])
    h2 = _leaky_relu(h1 @ params["w2"] + params["b2"])
    att = jax.nn.sigmoid(h2 @ params["w3"] + params["b3"])
    max_id = jnp.argmax(att, axis=1)
    theta_sel = params["theta"][max_id]                  # [B, 2, L+1]
    aug_loc = jnp.concatenate(
        [feat_loc, jnp.ones((batch, 1), dtype=feat_loc.dtype)], axis=1)
    pp = jnp.einsum("bkl,bl->bk", theta_sel, aug_loc)    # [B, 2]
    mu = pp[:, 0].reshape(-1, 1)
    delta = jnp.abs(pp[:, 1]).reshape(-1, 1) + EPS
    ln_delta = jnp.log(delta)
    p_minus_mu = (mu - feat_price) ** 2
    p_minus_mu_div_delta = p_minus_mu / delta ** 2 / 2.0
    loss = (jnp.sum(ln_delta) - jnp.sum(p_minus_mu_div_delta)) / batch
    return -loss


def init_params(key, user_dim, loc_dim, num_groups):
    ks = jax.random.split(key, 8)

    def lin(kw, kb, fan_in, fan_out):
        bound = 1.0 / jnp.sqrt(fan_in)
        w = jax.random.uniform(kw, (fan_in, fan_out), jnp.float32, -bound, bound)
        b = jax.random.uniform(kb, (fan_out,), jnp.float32, -bound, bound)
        return w, b

    w1, b1 = lin(ks[0], ks[1], user_dim, 32)
    w2, b2 = lin(ks[2], ks[3], 32, 16)
    w3, b3 = lin(ks[4], ks[5], 16, num_groups)
    theta_mu = jax.random.uniform(ks[6], (num_groups, 1, loc_dim + 1), jnp.float32, 3.0, 5.0)
    theta_dl = jax.random.uniform(ks[7], (num_groups, 1, loc_dim + 1), jnp.float32, 0.0, 1.0)
    theta = jnp.concatenate([theta_mu, theta_dl], axis=1)  # [K, 2, L+1]
    return dict(w1=w1, b1=b1, w2=w2, b2=b2, w3=w3, b3=b3, theta=theta)


if __name__ == "__main__":
    B, USER_DIM, LOC_DIM, K = 8, 8, 7, 4

    key = jax.random.PRNGKey(0)
    k_params, k_user, k_loc, k_price = jax.random.split(key, 4)
    params = init_params(k_params, USER_DIM, LOC_DIM, K)

    feat_user = jax.random.normal(k_user, (B, USER_DIM), jnp.float32)
    feat_loc = jax.random.normal(k_loc, (B, LOC_DIM), jnp.float32)
    feat_price = jax.random.uniform(k_price, (B, 1), jnp.float32, 1.0, 10.0)

    out = jax.block_until_ready(
        mi_price_likelihood_v2_forward(feat_user, feat_loc, feat_price, params))
    ref = reference_forward(feat_user, feat_loc, feat_price, params)
    assert jnp.allclose(out, ref, rtol=1e-4, atol=1e-4), (out, ref)

    # multi-tile grid + padded-batch masking path (B=300, tile_b=128 -> 3 grid steps)
    B2 = 300
    k_u2, k_l2, k_p2 = jax.random.split(jax.random.PRNGKey(1), 3)
    fu2 = jax.random.normal(k_u2, (B2, USER_DIM), jnp.float32)
    fl2 = jax.random.normal(k_l2, (B2, LOC_DIM), jnp.float32)
    fp2 = jax.random.uniform(k_p2, (B2, 1), jnp.float32, 1.0, 10.0)
    out2 = jax.block_until_ready(
        mi_price_likelihood_v2_forward(fu2, fl2, fp2, params, tile_b=128))
    ref2 = reference_forward(fu2, fl2, fp2, params)
    assert jnp.allclose(out2, ref2, rtol=1e-4, atol=1e-4), (out2, ref2)

    # default tile path: batch>128 is auto-split into >=2 tiles (v7x megacore sharding)
    out3 = jax.block_until_ready(
        mi_price_likelihood_v2_forward(fu2, fl2, fp2, params))
    assert jnp.allclose(out3, ref2, rtol=1e-4, atol=1e-4), (out3, ref2)

    # bf16 streaming of the user features only (loc/1/price tail stays f32).
    # Sanity-checked only: bf16 rounding of the MLP input can legitimately flip a
    # near-tied argmax, so exact loss equality is not required.
    out_bf16 = jax.block_until_ready(
        mi_price_likelihood_v2_forward(fu2, fl2, fp2, params, use_bf16=True))
    assert bool(jnp.isfinite(out_bf16)), out_bf16

    print("KERNEL_OK")
</pallas_src>

<mosaic_0001>
module attributes {stable_mosaic.version = 11 : i64} {
  func.func @_mi_price_kernel(%arg0: i32, %arg1: memref<8x128xf32, #tpu.memory_space<vmem>>, %arg2: memref<9x128xf32, #tpu.memory_space<vmem>>, %arg3: memref<32x8xf32, #tpu.memory_space<vmem>>, %arg4: memref<32x1xf32, #tpu.memory_space<vmem>>, %arg5: memref<16x32xf32, #tpu.memory_space<vmem>>, %arg6: memref<16x1xf32, #tpu.memory_space<vmem>>, %arg7: memref<4x16xf32, #tpu.memory_space<vmem>>, %arg8: memref<4x1xf32, #tpu.memory_space<vmem>>, %arg9: memref<8x9xf32, #tpu.memory_space<vmem>>, %arg10: memref<8x128xf32, #tpu.memory_space<vmem>>) attributes {dimension_semantics = [#tpu.dimension_semantics<parallel>], iteration_bounds = array<i64: 1>, scalar_prefetch = 0 : i64, scratch_operands = 0 : i64, tpu.core_type = #tpu.core_type<tc>, window_params = [{transform_indices = @transform_0, window_bounds = array<i64: 8, 128>}, {transform_indices = @transform_1, window_bounds = array<i64: 9, 128>}, {pipeline_mode = #tpu.pipeline_mode<synchronous>, transform_indices = @transform_2, window_bounds = array<i64: 32, 8>}, {pipeline_mode = #tpu.pipeline_mode<synchronous>, transform_indices = @transform_3, window_bounds = array<i64: 32, 1>}, {pipeline_mode = #tpu.pipeline_mode<synchronous>, transform_indices = @transform_4, window_bounds = array<i64: 16, 32>}, {pipeline_mode = #tpu.pipeline_mode<synchronous>, transform_indices = @transform_5, window_bounds = array<i64: 16, 1>}, {pipeline_mode = #tpu.pipeline_mode<synchronous>, transform_indices = @transform_6, window_bounds = array<i64: 4, 16>}, {pipeline_mode = #tpu.pipeline_mode<synchronous>, transform_indices = @transform_7, window_bounds = array<i64: 4, 1>}, {pipeline_mode = #tpu.pipeline_mode<synchronous>, transform_indices = @transform_8, window_bounds = array<i64: 8, 9>}, {transform_indices = @transform_9, window_bounds = array<i64: 8, 128>}]} {
    %c0 = arith.constant 0 : index
    %c0_0 = arith.constant 0 : index
    %0 = vector.load %arg1[%c0, %c0_0] : memref<8x128xf32, #tpu.memory_space<vmem>>, vector<8x128xf32>
    %c0_1 = arith.constant 0 : index
    %c0_2 = arith.constant 0 : index
    %1 = vector.load %arg2[%c0_1, %c0_2] : memref<9x128xf32, #tpu.memory_space<vmem>>, vector<9x128xf32>
    %c0_3 = arith.constant 0 : index
    %c0_4 = arith.constant 0 : index
    %2 = vector.load %arg3[%c0_3, %c0_4] : memref<32x8xf32, #tpu.memory_space<vmem>>, vector<32x8xf32>
    %cst = arith.constant dense<0.000000e+00> : vector<32x128xf32>
    %3 = tpu.matmul %2, %0, %cst {dimension_numbers = #tpu.dot_dimension_numbers<[1], [0], [0], [1], [0, 0, 1, 1], [], []>} : vector<32x8xf32>, vector<8x128xf32>, vector<32x128xf32> -> vector<32x128xf32>
    %c0_5 = arith.constant 0 : index
    %c0_6 = arith.constant 0 : index
    %4 = vector.load %arg4[%c0_5, %c0_6] : memref<32x1xf32, #tpu.memory_space<vmem>>, vector<32x1xf32>
    %5 = vector.broadcast %4 : vector<32x1xf32> to vector<32x128xf32>
    %6 = arith.addf %3, %5 : vector<32x128xf32>
    %cst_7 = arith.constant 0.000000e+00 : f32
    %7 = vector.broadcast %cst_7 : f32 to vector<32x128xf32>
    %8 = arith.cmpf ogt, %6, %7 : vector<32x128xf32>
    %cst_8 = arith.constant 0.00999999977 : f32
    %9 = vector.broadcast %cst_8 : f32 to vector<32x128xf32>
    %10 = arith.mulf %9, %6 : vector<32x128xf32>
    %11 = arith.select %8, %6, %10 : vector<32x128xi1>, vector<32x128xf32>
    %c0_9 = arith.constant 0 : index
    %c0_10 = arith.constant 0 : index
    %12 = vector.load %arg5[%c0_9, %c0_10] : memref<16x32xf32, #tpu.memory_space<vmem>>, vector<16x32xf32>
    %cst_11 = arith.constant dense<0.000000e+00> : vector<16x128xf32>
    %13 = tpu.matmul %12, %11, %cst_11 {dimension_numbers = #tpu.dot_dimension_numbers<[1], [0], [0], [1], [0, 0, 1, 1], [], []>} : vector<16x32xf32>, vector<32x128xf32>, vector<16x128xf32> -> vector<16x128xf32>
    %c0_12 = arith.constant 0 : index
    %c0_13 = arith.constant 0 : index
    %14 = vector.load %arg6[%c0_12, %c0_13] : memref<16x1xf32, #tpu.memory_space<vmem>>, vector<16x1xf32>
    %15 = vector.broadcast %14 : vector<16x1xf32> to vector<16x128xf32>
    %16 = arith.addf %13, %15 : vector<16x128xf32>
    %cst_14 = arith.constant 0.000000e+00 : f32
    %17 = vector.broadcast %cst_14 : f32 to vector<16x128xf32>
    %18 = arith.cmpf ogt, %16, %17 : vector<16x128xf32>
    %cst_15 = arith.constant 0.00999999977 : f32
    %19 = vector.broadcast %cst_15 : f32 to vector<16x128xf32>
    %20 = arith.mulf %19, %16 : vector<16x128xf32>
    %21 = arith.select %18, %16, %20 : vector<16x128xi1>, vector<16x128xf32>
    %c0_16 = arith.constant 0 : index
    %c0_17 = arith.constant 0 : index
    %22 = vector.load %arg7[%c0_16, %c0_17] : memref<4x16xf32, #tpu.memory_space<vmem>>, vector<4x16xf32>
    %cst_18 = arith.constant dense<0.000000e+00> : vector<4x128xf32>
    %23 = tpu.matmul %22, %21, %cst_18 {dimension_numbers = #tpu.dot_dimension_numbers<[1], [0], [0], [1], [0, 0, 1, 1], [], []>} : vector<4x16xf32>, vector<16x128xf32>, vector<4x128xf32> -> vector<4x128xf32>
    %c0_19 = arith.constant 0 : index
    %c0_20 = arith.constant 0 : index
    %24 = vector.load %arg8[%c0_19, %c0_20] : memref<4x1xf32, #tpu.memory_space<vmem>>, vector<4x1xf32>
    %25 = vector.broadcast %24 : vector<4x1xf32> to vector<4x128xf32>
    %26 = arith.addf %23, %25 : vector<4x128xf32>
    %c0_21 = arith.constant 0 : index
    %c0_22 = arith.constant 0 : index
    %27 = vector.load %arg9[%c0_21, %c0_22] : memref<8x9xf32, #tpu.memory_space<vmem>>, vector<8x9xf32>
    %cst_23 = arith.constant dense<0.000000e+00> : vector<8x128xf32>
    %28 = tpu.matmul %27, %1, %cst_23 {dimension_numbers = #tpu.dot_dimension_numbers<[1], [0], [0], [1], [0, 0, 1, 1], [], []>} : vector<8x9xf32>, vector<9x128xf32>, vector<8x128xf32> -> vector<8x128xf32>
    %29 = vector.extract_strided_slice %1 {offsets = [8, 0], sizes = [1, 128], strides = [1, 1]} : vector<9x128xf32> to vector<1x128xf32>
    %30 = vector.extract_strided_slice %26 {offsets = [0, 0], sizes = [1, 128], strides = [1, 1]} : vector<4x128xf32> to vector<1x128xf32>
    %31 = vector.extract_strided_slice %26 {offsets = [1, 0], sizes = [1, 128], strides = [1, 1]} : vector<4x128xf32> to vector<1x128xf32>
    %32 = vector.extract_strided_slice %26 {offsets = [2, 0], sizes = [1, 128], strides = [1, 1]} : vector<4x128xf32> to vector<1x128xf32>
    %33 = vector.extract_strided_slice %26 {offsets = [3, 0], sizes = [1, 128], strides = [1, 1]} : vector<4x128xf32> to vector<1x128xf32>
    %34 = arith.maximumf %30, %31 : vector<1x128xf32>
    %35 = arith.maximumf %34, %32 : vector<1x128xf32>
    %36 = arith.maximumf %35, %33 : vector<1x128xf32>
    %cst_24 = arith.constant 1.000000e+00 : f32
    %37 = vector.broadcast %cst_24 : f32 to vector<1x128xf32>
    %cst_25 = arith.constant 0.000000e+00 : f32
    %38 = vector.broadcast %cst_25 : f32 to vector<1x128xf32>
    %cst_26 = arith.constant 0.000000e+00 : f32
    %39 = vector.broadcast %cst_26 : f32 to vector<1x128xf32>
    %40 = arith.cmpf oeq, %30, %36 : vector<1x128xf32>
    %cst_27 = arith.constant 0.000000e+00 : f32
    %41 = vector.broadcast %cst_27 : f32 to vector<1x128xf32>
    %42 = arith.cmpf ogt, %37, %41 : vector<1x128xf32>
    %43 = arith.andi %40, %42 : vector<1x128xi1>
    %cst_28 = arith.constant 1.000000e+00 : f32
    %cst_29 = arith.constant 0.000000e+00 : f32
    %44 = vector.broadcast %cst_28 : f32 to vector<1x128xf32>
    %45 = vector.broadcast %cst_29 : f32 to vector<1x128xf32>
    %46 = arith.select %43, %44, %45 : vector<1x128xi1>, vector<1x128xf32>
    %47 = arith.subf %37, %46 : vector<1x128xf32>
    %48 = vector.extract_strided_slice %28 {offsets = [0, 0], sizes = [1, 128], strides = [1, 1]} : vector<8x128xf32> to vector<1x128xf32>
    %49 = arith.mulf %46, %48 : vector<1x128xf32>
    %50 = arith.addf %38, %49 : vector<1x128xf32>
    %51 = vector.extract_strided_slice %28 {offsets = [4, 0], sizes = [1, 128], strides = [1, 1]} : vector<8x128xf32> to vector<1x128xf32>
    %52 = arith.mulf %46, %51 : vector<1x128xf32>
    %53 = arith.addf %39, %52 : vector<1x128xf32>
    %54 = arith.cmpf oeq, %31, %36 : vector<1x128xf32>
    %cst_30 = arith.constant 0.000000e+00 : f32
    %55 = vector.broadcast %cst_30 : f32 to vector<1x128xf32>
    %56 = arith.cmpf ogt, %47, %55 : vector<1x128xf32>
    %57 = arith.andi %54, %56 : vector<1x128xi1>
    %cst_31 = arith.constant 1.000000e+00 : f32
    %cst_32 = arith.constant 0.000000e+00 : f32
    %58 = vector.broadcast %cst_31 : f32 to vector<1x128xf32>
    %59 = vector.broadcast %cst_32 : f32 to vector<1x128xf32>
    %60 = arith.select %57, %58, %59 : vector<1x128xi1>, vector<1x128xf32>
    %61 = arith.subf %47, %60 : vector<1x128xf32>
    %62 = vector.extract_strided_slice %28 {offsets = [1, 0], sizes = [1, 128], strides = [1, 1]} : vector<8x128xf32> to vector<1x128xf32>
    %63 = arith.mulf %60, %62 : vector<1x128xf32>
    %64 = arith.addf %50, %63 : vector<1x128xf32>
    %65 = vector.extract_strided_slice %28 {offsets = [5, 0], sizes = [1, 128], strides = [1, 1]} : vector<8x128xf32> to vector<1x128xf32>
    %66 = arith.mulf %60, %65 : vector<1x128xf32>
    %67 = arith.addf %53, %66 : vector<1x128xf32>
    %68 = arith.cmpf oeq, %32, %36 : vector<1x128xf32>
    %cst_33 = arith.constant 0.000000e+00 : f32
    %69 = vector.broadcast %cst_33 : f32 to vector<1x128xf32>
    %70 = arith.cmpf ogt, %61, %69 : vector<1x128xf32>
    %71 = arith.andi %68, %70 : vector<1x128xi1>
    %cst_34 = arith.constant 1.000000e+00 : f32
    %cst_35 = arith.constant 0.000000e+00 : f32
    %72 = vector.broadcast %cst_34 : f32 to vector<1x128xf32>
    %73 = vector.broadcast %cst_35 : f32 to vector<1x128xf32>
    %74 = arith.select %71, %72, %73 : vector<1x128xi1>, vector<1x128xf32>
    %75 = arith.subf %61, %74 : vector<1x128xf32>
    %76 = vector.extract_strided_slice %28 {offsets = [2, 0], sizes = [1, 128], strides = [1, 1]} : vector<8x128xf32> to vector<1x128xf32>
    %77 = arith.mulf %74, %76 : vector<1x128xf32>
    %78 = arith.addf %64, %77 : vector<1x128xf32>
    %79 = vector.extract_strided_slice %28 {offsets = [6, 0], sizes = [1, 128], strides = [1, 1]} : vector<8x128xf32> to vector<1x128xf32>
    %80 = arith.mulf %74, %79 : vector<1x128xf32>
    %81 = arith.addf %67, %80 : vector<1x128xf32>
    %82 = arith.cmpf oeq, %33, %36 : vector<1x128xf32>
    %cst_36 = arith.constant 0.000000e+00 : f32
    %83 = vector.broadcast %cst_36 : f32 to vector<1x128xf32>
    %84 = arith.cmpf ogt, %75, %83 : vector<1x128xf32>
    %85 = arith.andi %82, %84 : vector<1x128xi1>
    %cst_37 = arith.constant 1.000000e+00 : f32
    %cst_38 = arith.constant 0.000000e+00 : f32
    %86 = vector.broadcast %cst_37 : f32 to vector<1x128xf32>
    %87 = vector.broadcast %cst_38 : f32 to vector<1x128xf32>
    %88 = arith.select %85, %86, %87 : vector<1x128xi1>, vector<1x128xf32>
    %89 = vector.extract_strided_slice %28 {offsets = [3, 0], sizes = [1, 128], strides = [1, 1]} : vector<8x128xf32> to vector<1x128xf32>
    %90 = arith.mulf %88, %89 : vector<1x128xf32>
    %91 = arith.addf %78, %90 : vector<1x128xf32>
    %92 = vector.extract_strided_slice %28 {offsets = [7, 0], sizes = [1, 128], strides = [1, 1]} : vector<8x128xf32> to vector<1x128xf32>
    %93 = arith.mulf %88, %92 : vector<1x128xf32>
    %94 = arith.addf %81, %93 : vector<1x128xf32>
    %95 = math.absf %94 : vector<1x128xf32>
    %cst_39 = arith.constant 9.99999993E-9 : f32
    %96 = vector.broadcast %cst_39 : f32 to vector<1x128xf32>
    %97 = arith.addf %95, %96 : vector<1x128xf32>
    %98 = math.log %97 : vector<1x128xf32>
    %99 = arith.subf %91, %29 : vector<1x128xf32>
    %100 = arith.mulf %99, %99 : vector<1x128xf32>
    %cst_40 = arith.constant 5.000000e-01 : f32
    %101 = vector.broadcast %cst_40 : f32 to vector<1x128xf32>
    %102 = arith.mulf %100, %101 : vector<1x128xf32>
    %103 = arith.mulf %97, %97 : vector<1x128xf32>
    %104 = arith.divf %102, %103 : vector<1x128xf32>
    %c128_i32 = arith.constant 128 : i32
    %105 = arith.muli %arg0, %c128_i32 : i32
    %106 = tpu.iota {dimensions = array<i32: 1>} : vector<1x128xi32>
    %107 = vector.broadcast %105 : i32 to vector<1x128xi32>
    %108 = arith.addi %107, %106 : vector<1x128xi32>
    %c8_i32 = arith.constant 8 : i32
    %109 = vector.broadcast %c8_i32 : i32 to vector<1x128xi32>
    %110 = arith.cmpi slt, %108, %109 : vector<1x128xi32>
    %111 = arith.extui %110 : vector<1x128xi1> to vector<1x128xi32>
    %112 = arith.sitofp %111 : vector<1x128xi32> to vector<1x128xf32>
    %113 = arith.subf %98, %104 : vector<1x128xf32>
    %114 = arith.mulf %113, %112 : vector<1x128xf32>
    %115 = vector.shape_cast %114 : vector<1x128xf32> to vector<1x1x128xf32>
    %cst_41 = arith.constant dense<0.000000e+00> : vector<1xf32>
    %116 = vector.multi_reduction <add>, %115, %cst_41 [1, 2] : vector<1x1x128xf32> to vector<1xf32>
    %117 = vector.shape_cast %116 : vector<1xf32> to vector<1x1x1xf32>
    %118 = vector.extract %117[0, 0, 0] : f32 from vector<1x1x1xf32>
    %119 = vector.broadcast %118 : f32 to vector<8x128xf32>
    %c0_42 = arith.constant 0 : index
    %c0_43 = arith.constant 0 : index
    %120 = vector.load %arg10[%c0_42, %c0_43] : memref<8x128xf32, #tpu.memory_space<vmem>>, vector<8x128xf32>
    tpu.vector_store %arg10[%c0_42, %c0_43], %119 {strides = array<i32>} : memref<8x128xf32, #tpu.memory_space<vmem>>, vector<8x128xf32>,
    return
  }
  func.func @transform_0(%arg0: i32) -> (i32, i32) {
    %c0_i32 = arith.constant 0 : i32
    %c0_i32_0 = arith.constant 0 : i32
    return %c0_i32, %arg0 : i32, i32
  }
  func.func @transform_1(%arg0: i32) -> (i32, i32) {
    %c0_i32 = arith.constant 0 : i32
    %c0_i32_0 = arith.constant 0 : i32
    return %c0_i32, %arg0 : i32, i32
  }
  func.func @transform_2(%arg0: i32) -> (i32, i32) {
    %c0_i32 = arith.constant 0 : i32
    %c0_i32_0 = arith.constant 0 : i32
    %c0_i32_1 = arith.constant 0 : i32
    return %c0_i32, %c0_i32_0 : i32, i32
  }
  func.func @transform_3(%arg0: i32) -> (i32, i32) {
    %c0_i32 = arith.constant 0 : i32
    %c0_i32_0 = arith.constant 0 : i32
    %c0_i32_1 = arith.constant 0 : i32
    return %c0_i32, %c0_i32_0 : i32, i32
  }
  func.func @transform_4(%arg0: i32) -> (i32, i32) {
    %c0_i32 = arith.constant 0 : i32
    %c0_i32_0 = arith.constant 0 : i32
    %c0_i32_1 = arith.constant 0 : i32
    return %c0_i32, %c0_i32_0 : i32, i32
  }
  func.func @transform_5(%arg0: i32) -> (i32, i32) {
    %c0_i32 = arith.constant 0 : i32
    %c0_i32_0 = arith.constant 0 : i32
    %c0_i32_1 = arith.constant 0 : i32
    return %c0_i32, %c0_i32_0 : i32, i32
  }
  func.func @transform_6(%arg0: i32) -> (i32, i32) {
    %c0_i32 = arith.constant 0 : i32
    %c0_i32_0 = arith.constant 0 : i32
    %c0_i32_1 = arith.constant 0 : i32
    return %c0_i32, %c0_i32_0 : i32, i32
  }
  func.func @transform_7(%arg0: i32) -> (i32, i32) {
    %c0_i32 = arith.constant 0 : i32
    %c0_i32_0 = arith.constant 0 : i32
    %c0_i32_1 = arith.constant 0 : i32
    return %c0_i32, %c0_i32_0 : i32, i32
  }
  func.func @transform_8(%arg0: i32) -> (i32, i32) {
    %c0_i32 = arith.constant 0 : i32
    %c0_i32_0 = arith.constant 0 : i32
    %c0_i32_1 = arith.constant 0 : i32
    return %c0_i32, %c0_i32_0 : i32, i32
  }
  func.func @transform_9(%arg0: i32) -> (i32, i32) {
    %c0_i32 = arith.constant 0 : i32
    %c0_i32_0 = arith.constant 0 : i32
    return %arg0, %c0_i32 : i32, i32
  }
}

</mosaic_0001>

<bundles_post_ra>
// kernel: tpu_custom_call.1
= control target key start
LH: loop header
LB: loop body
LE: loop exit
PB: predicated region body
PF: predicated region fallthrough
CT: control target
= control target key end

     0   :  { %vm64_vm0 = vcmask 64512   ;;  %v683_v5 = vmov 0   ;;  %s829_s0 = inlined_call_operand.vmem [shape: f32[8,128], index: 0, kind: input, shape index: {}]   ;;  %s830_s1 = inlined_call_operand.vmem [shape: f32[9,128], index: 1, kind: input, shape index: {}]   ;;  %s831_s2 = inlined_call_operand.vmem [shape: f32[32,8], index: 2, kind: input, shape index: {}]   ;;  %s832_s3 = inlined_call_operand.vmem [shape: f32[32,1], index: 3, kind: input, shape index: {}]   ;;  %s833_s4 = inlined_call_operand.vmem [shape: f32[16,32], index: 4, kind: input, shape index: {}]   ;;  %s834_s5 = inlined_call_operand.vmem [shape: f32[16,1], index: 5, kind: input, shape index: {}]   ;;  %s835_s6 = inlined_call_operand.vmem [shape: f32[4,16], index: 6, kind: input, shape index: {}]   ;;  %s836_s7 = inlined_call_operand.vmem [shape: f32[4,1], index: 7, kind: input, shape index: {}]   ;;  %s837_s8 = inlined_call_operand.vmem [shape: f32[8,9], index: 8, kind: input, shape index: {}]   ;;  %s838_s9 = inlined_call_operand.hbm [shape: f32[8,128], index: 9, kind: output, shape index: {}]  }
   0x1   :  { %v33_v0 = vld [vmem:[%s829_s0] sm:$0xff]  ;;  %v37_v2 = vld [vmem:[%s831_s2 + $0x8] sm:$0xff]  ;;  %v38_v3 = vld [vmem:[%s831_s2 + $0x10] sm:$0xff]  ;;  %653 = vset.pattern.permute.xlu0 %v683_v5  ;;  %654 = vset.pattern.permute.xlu1 %v683_v5 }
   0x2   :  { %v36_v1 = vld [vmem:[%s831_s2] sm:$0xff]  ;;  %597 = vmatprep.subr.mxu0 %v33_v0  ;;  %v42_v6 = vld [vmem:[%s832_s3 + $0x10] sm:$0xff]  ;;  %v39_v7 = vld [vmem:[%s831_s2 + $0x18] sm:$0xff] }
   0x3   :  { %599 = vmatprep.mubr.msk.f32.mxu0 %vm64_vm0, %v36_v1  ;;  %v40_v4 = vld [vmem:[%s832_s3] sm:$0xff]  ;;  %598 = vmatpush3.msra.mxu0 %v33_v0  ;;  %v41_v8 = vld [vmem:[%s832_s3 + $0x8] sm:$0xff] }
   0x4   :  { %600 = vmatmul.mubr.msk.f32.vlgmr.msra.gmra.mrb[0].mxu0 %vm64_vm0, %v37_v2  ;;  %46 = vperm.xlu0 %653, %v40_v4  }
   0x5   :  { %602 = vmatprep.mubr.msk.f32.mxu0 %vm64_vm0, %v38_v3 }
   0x6   :  { %14 = vsyncpa [#allocation3], 0  ;;  %56 = vperm.xlu1 %654, %v42_v6   ;;  %v43_v9 = vld [vmem:[%s832_s3 + $0x18] sm:$0xff]  ;;  %v176_v10 = vld [vmem:[%s834_s5] sm:$0xff]  ;;  %vm188_vm1 = vcmask 261120   ;;  %v684_v37 = vmov 0.0|0.0  }
   0x7   :  { %v177_v11 = vld [vmem:[%s834_s5 + $0x8] sm:$0xff]  ;;  %v277_v12 = vld [vmem:[%s836_s7] sm:$0xf]  ;;  %638 = vmatprep.subr.bf16.mxu0 %v684_v37  ;;  %vm685_vm6 = vmmov 0   ;;  %v686_v38 = vmov 0.0   ;;  %vm362_vm7 = vcmask 1040384  }
   0x8   :  { %603 = vmatmul.mubr.msk.f32.gmra.mrb[2].mxu0 %vm64_vm0, %v39_v7  ;;  %51 = vperm.xlu0 %653, %v41_v8   ;;  %v174_v13 = vld [vmem:[%s833_s4] sm:$0xff]  ;;  %v175_v36 = vld [vmem:[%s833_s4 + $0x8] sm:$0xff]  ;;  %vm687_vm8 = vmmov 1   ;;  %vm358_vm10 = vcmask 72704   ;;  %vm283_vm13 = vcmask 130048  }
   0x9   :  { %613 = vmatprep.mubr.msk.f32.mxu1 %vm188_vm1, %v174_v13  ;;  %620 = vmatprep.mubr.msk.f32.mxu0 %vm685_vm6, %v686_v38  ;;  %v34_v39 = vld [vmem:[%s830_s1] sm:$0xff]  ;;  %v797_v40 = vld [vmem:[%s830_s1 + $0x8] sm:$0x1]  ;;  %vm643_vm9 = vmpackc.low %vm362_vm7, %vm687_vm8 }
   0xa   :  { %61 = vperm.xlu1 %654, %v43_v9   ;;  %v642_v41 = vpack.c.bf16 %v797_v40, %v34_v39  ;;  %v357_v42 = vld [vmem:[%s837_s8] sm:$0xff] }
   0xb   :  { %v276_v54 = vld [vmem:[%s835_s6] sm:$0xf]  ;;  %s688_s6 = smov [#allocation2]  }
   0xc   :  { %180 = vperm.xlu0 %653, %v176_v10   ;;  %s562_s8 = sshll.u32 %s688_s6, 4  ;;  %s563_s8 = int_to_ptr.vmem [resolvable:$true] %s562_s8 }
   0xd   :  { %s659_s18 = scalar_lea.vmem %s563_s8, 128  ;;  %p664_p1 = scmp.lt.s32.totalorder %s563_s8, %s563_s8 }
   0xe   :  { %185 = vperm.xlu1 %654, %v177_v11   ;;  %p660_p0 = scmp.ne.s32.totalorder %s563_s8, %s659_s18  ;;  %p665_p2 = scmp.lt.s32.totalorder %s659_s18, %s659_s18 }
  0x10   :  { %280 = vperm.xlu0 %653, %v277_v12   ;;  %p666_p3 = por %p665_p2, %p664_p1 }
  0x12   :  { %p667_p4 = pnand %p666_p3, %p660_p0 }
  0x83   :  { %v47_v14 = vpop.permute.xlu0 %46 }
  0x85   :  { %v57_v15 = vpop.permute.xlu1 %56 }
  0x87   :  { %v52_v16 = vpop.permute.xlu0 %51 }
  0x89   :  { %v62_v22 = vpop.permute.xlu1 %61 }
  0x8b   :  { %v181_v45 = vpop.permute.xlu0 %180 }
  0x8d   :  { %v186_v43 = vpop.permute.xlu1 %185 }
  0x8f   :  { %v281_v57 = vpop.permute.xlu0 %280 }
  0xd7   :  { %v601_v17 = vpop.f32.mrb[0].mxu0 }
  0xd8   :  { %v149_v18 = vadd.f32 %v601_v17, %v52_v16  ;;  %v143_v19 = vpop.f32.mrb[1].mxu0 }
  0xd9   :  { %v144_v20 = vadd.f32 %v143_v19, %v47_v14 }
  0xda   :  { %v167_v21 = vmul.f32 0.01, %v149_v18  ;;  %vm163_vm2 = vcmp.gt.f32.partialorder %v149_v18, 0.0 }
  0xdb   :  { %v166_v23 = vmul.f32 0.01, %v144_v20  ;;  %v604_v24 = vpop.f32.mrb[2].mxu0  ;;  %vm162_vm3 = vcmp.gt.f32.partialorder %v144_v20, 0.0 }
  0xdc   :  { %v159_v25 = vadd.f32 %v604_v24, %v62_v22  ;;  %v153_v26 = vpop.f32.mrb[3].mxu0  ;;  %v171_v27 = vsel %vm163_vm2, %v149_v18, %v167_v21 }
  0xdd   :  { %v154_v28 = vadd.f32 %v153_v26, %v57_v15  ;;  %v170_v29 = vsel %vm162_vm3, %v144_v20, %v166_v23 }
  0xde   :  { %vm165_vm4 = vcmp.gt.f32.partialorder %v159_v25, 0.0  ;;  %v169_v30 = vmul.f32 0.01, %v159_v25  ;;  %v630_v31 = vpack.c.bf16 %v171_v27, %v170_v29 }
  0xdf   :  { %vm164_vm5 = vcmp.gt.f32.partialorder %v154_v28, 0.0  ;;  %v168_v32 = vmul.f32 0.01, %v154_v28 }
  0xe0   :  { %631 = vmatprep.subr.bf16.mxu1 %v630_v31  ;;  %v173_v33 = vsel %vm165_vm4, %v159_v25, %v169_v30 }
  0xe1   :  { %633 = vmatpush3.bf16.msra.mxu1 %v630_v31  ;;  %v172_v34 = vsel %vm164_vm5, %v154_v28, %v168_v32 }
  0xe2   :  { %v634_v35 = vpack.c.bf16 %v173_v33, %v172_v34 }
  0xe4   :  { %635 = vmatprep.subr.bf16.mxu1 %v634_v35 }
  0xe5   :  { %637 = vmatpush3.bf16.msra.mxu1 %v634_v35 }
  0xe6   :  { %641 = vmatprep.subr.bf16.mxu1 %v684_v37 }
  0xe8   :  { %614 = vmatmul.mubr.msk.f32.vlgmr.msra.gmra.mrb[0].mxu1 %vm188_vm1, %v175_v36 }
  0xe9   :  { %627 = vmatprep.mubr.msk.f32.mxu1 %vm685_vm6, %v686_v38  ;;  %644 = vmatpush3.bf16.msk.msra.mxu1 %vm643_vm9, %v642_v41 }
  0xec   :  { %628 = vmatmul.mubr.msk.f32.vlgmr.msra.gmra.mrb[2].mxu1 %vm358_vm10, %v357_v42 }
 0x1bb   :  { %v615_v44 = vpop.f32.mrb[0].mxu1 }
 0x1bc   :  { %v267_v46 = vadd.f32 %v615_v44, %v186_v43  ;;  %v261_v47 = vpop.f32.mrb[1].mxu1 }
 0x1bd   :  { %v262_v48 = vadd.f32 %v261_v47, %v181_v45 }
 0x1be   :  { %vm271_vm11 = vcmp.gt.f32.partialorder %v267_v46, 0.0  ;;  %v273_v49 = vmul.f32 0.01, %v267_v46 }
 0x1bf   :  { %vm270_vm12 = vcmp.gt.f32.partialorder %v262_v48, 0.0  ;;  %v272_v50 = vmul.f32 0.01, %v262_v48  ;;  %v432_v55 = vpop.f32.mrb[2].mxu1 }
 0x1c0   :  { %v275_v51 = vsel %vm271_vm11, %v267_v46, %v273_v49  ;;  %v629_v56 = vpop.f32.mrb[3].mxu1  ;;  %v454_v3 = vrot.slane %v432_v55, 4 }
 0x1c1   :  { %v274_v52 = vsel %vm270_vm12, %v262_v48, %v272_v50 }
 0x1c2   :  { %v639_v53 = vpack.c.bf16 %v275_v51, %v274_v52 }
 0x1c4   :  { %640 = vmatpush3.bf16.msra.mxu0 %v639_v53 }
 0x1c7   :  { %621 = vmatmul.mubr.msk.f32.vlgmr.msra.gmra.mrb[4].mxu0 %vm283_vm13, %v276_v54 }
 0x29a   :  { %v353_v58 = vpop.f32.mrb[4].mxu0 }
 0x29b   :  { %v354_v59 = vadd.f32 %v353_v58, %v281_v57  ;;  %v622_v60 = vpop.f32.mrb[5].mxu0 }
 0x29d   :  { %v437_v61 = vrot.slane %v354_v59, 1  ;;  %v440_v63 = vrot.slane %v354_v59, 2  ;;  %v443_v1 = vrot.slane %v354_v59, 3 }
 0x29f   :  { %v439_v62 = vmax.f32 %v354_v59, %v437_v61 }
 0x2a1   :  { %v442_v0 = vmax.f32 %v439_v62, %v440_v63 }
 0x2a3   :  { %v445_v2 = vmax.f32 %v442_v0, %v443_v1 }
 0x2a5   :  { %vm446_vm14 = vcmp.eq.f32.partialorder %v354_v59, %v445_v2  ;;  %v459_v9 = vrot.slane %v445_v2, 7  ;;  %v482_v21 = vrot.slane %v445_v2, 6  ;;  %v505_v32 = vrot.slane %v445_v2, 5 }
 0x2a6   :  { %v449_v4 = vsel %vm446_vm14, 1.0, %v686_v38 }
 0x2a7   :  { %v450_v6 = vsub.f32 1.0, %v449_v4  ;;  %v451_v7 = vmul.f32 %v449_v4, %v432_v55  ;;  %v456_v8 = vmul.f32 %v454_v3, %v449_v4  ;;  %vm461_vm0 = vcmp.eq.f32.partialorder %v354_v59, %v459_v9 }
 0x2a8   :  { %vm484_vm4 = vcmp.eq.f32.partialorder %v354_v59, %v482_v21  ;;  %vm507_vm9 = vcmp.eq.f32.partialorder %v354_v59, %v505_v32 }
 0x2a9   :  { %vm462_vm15 = vcmp.gt.f32.partialorder %v450_v6, 0.0 }
 0x2aa   :  { %v463_v10 = vsel %vm462_vm15, 1, %v683_v5 }
 0x2ab   :  { %v464_v11 = vrot.slane %v463_v10, 7 }
 0x2ad   :  { %vm465_vm1 = vcmp.ne.s32.totalorder %v464_v11, 0 }
 0x2ae   :  { %vm466_vm2 = vmand %vm461_vm0, %vm465_vm1 }
 0x2af   :  { %v467_v12 = vsel %vm466_vm2, 1.0, %v686_v38 }
 0x2b0   :  { %v469_v13 = vrot.slane %v467_v12, 1  ;;  %v472_v14 = vmul.f32 %v467_v12, %v432_v55  ;;  %v477_v15 = vmul.f32 %v467_v12, %v454_v3 }
 0x2b2   :  { %v471_v16 = vsub.f32 %v450_v6, %v469_v13  ;;  %v474_v17 = vrot.slane %v472_v14, 1  ;;  %v479_v18 = vrot.slane %v477_v15, 1 }
 0x2b4   :  { %v476_v19 = vadd.f32 %v474_v17, %v451_v7  ;;  %v481_v20 = vadd.f32 %v479_v18, %v456_v8  ;;  %vm485_vm3 = vcmp.gt.f32.partialorder %v471_v16, 0.0 }
 0x2b5   :  { %v486_v22 = vsel %vm485_vm3, 1, %v683_v5 }
 0x2b6   :  { %v487_v23 = vrot.slane %v486_v22, 6 }
 0x2b8   :  { %vm488_vm5 = vcmp.ne.s32.totalorder %v487_v23, 0 }
 0x2b9   :  { %vm489_vm6 = vmand %vm484_vm4, %vm488_vm5 }
 0x2ba   :  { %v490_v24 = vsel %vm489_vm6, 1.0, %v686_v38 }
 0x2bb   :  { %v492_v25 = vrot.slane %v490_v24, 2  ;;  %v495_v26 = vmul.f32 %v490_v24, %v432_v55  ;;  %v500_v27 = vmul.f32 %v490_v24, %v454_v3 }
 0x2bd   :  { %v494_v28 = vsub.f32 %v471_v16, %v492_v25  ;;  %v497_v29 = vrot.slane %v495_v26, 2  ;;  %v502_v30 = vrot.slane %v500_v27, 2 }
 0x2bf   :  { %v499_v31 = vadd.f32 %v497_v29, %v476_v19  ;;  %vm508_vm8 = vcmp.gt.f32.partialorder %v494_v28, 0.0  ;;  %v504_v33 = vadd.f32 %v502_v30, %v481_v20 }
 0x2c0   :  { %v509_v34 = vsel %vm508_vm8, 1, %v683_v5  ;;  %v535_v5 = vlaneseq }
 0x2c1   :  { %v510_v35 = vrot.slane %v509_v34, 5 }
 0x2c2   :  { %v536_v50 = vand.u32 127, %v535_v5 }
 0x2c3   :  { %vm511_vm10 = vcmp.ne.s32.totalorder %v510_v35, 0 }
 0x2c4   :  { %vm512_vm11 = vmand %vm507_vm9, %vm511_vm10  ;;  %vm539_vm12 = vcmp.lt.s32.totalorder %v536_v50, 8 }
 0x2c5   :  { %v513_v36 = vsel %vm512_vm11, 1.0, %v686_v38  ;;  %v579_v56 = vsel %vm539_vm12, 1.0, %v686_v38 }
 0x2c6   :  { %v514_v37 = vmul.f32 %v513_v36, %v432_v55  ;;  %v519_v39 = vmul.f32 %v513_v36, %v454_v3 }
 0x2c8   :  { %v516_v41 = vrot.slane %v514_v37, 3  ;;  %v521_v42 = vrot.slane %v519_v39, 3 }
 0x2ca   :  { %v518_v43 = vadd.f32 %v516_v41, %v499_v31  ;;  %v523_v44 = vadd.f32 %v521_v42, %v504_v33 }
 0x2cc   :  { %v524_v45 = vand.u32 2147483647, %v523_v44  ;;  %v528_v48 = vsub.f32 %v518_v43, %v797_v40 }
 0x2ce   :  { %v525_v46 = vadd.f32 1e-08, %v524_v45  ;;  %v529_v49 = vmul.f32 %v528_v48, %v528_v48 }
 0x2d0   :  { %655 = vlog2.f32 %v525_v46  ;;  %v531_v47 = vmul.f32 %v525_v46, %v525_v46  ;;  %v530_v52 = vmul.f32 0.5, %v529_v49 }
 0x2d2   :  { %657 = vrcp.f32 %v531_v47 }
 0x2da   :  { %v656_v51 = vpop.eup %655 }
 0x2db   :  { %v527_v54 = vmul.f32 0.6931472, %v656_v51 }
 0x2dc   :  { %v658_v53 = vpop.eup %657 }
 0x2dd   :  { %v533_v55 = vmul.f32 %v658_v53, %v530_v52 }
 0x2df   :  { %v542_v57 = vsub.f32 %v527_v54, %v533_v55 }
 0x2e1   :  { %v543_v58 = vmul.f32 %v579_v56, %v542_v57 }
 0x2e3   :  { %v544_v59 = vsel %vm362_vm7, %v543_v58, 0.0 }
 0x2e4   :  { %545 = vadd.xlane.f32.xlu1 %v544_v59 }
 0x371   :  { %v546_v60 = vpop.xlane.xlu1 %545 }
 0x372   :  { %v547_v61 = vrot.slane %v546_v60, 4 }
 0x374   :  { %v548_v62 = vadd.f32 %v547_v61, %v546_v60 }
 0x376   :  { %v549_v40 = vrot.slane %v548_v62, 2 }
 0x378   :  { %v550_v63 = vadd.f32 %v549_v40, %v548_v62 }
 0x37a   :  { %v551_v0 = vrot.slane %v550_v63, 1 }
 0x37c   :  { %v552_v1 = vadd.f32 %v551_v0, %v550_v63 }
 0x37e   :  { %645 = vpush %v552_v1 }
 0x3af   :  { %s646_s17 = spop %645 }
 0x3b0   :  { %v554_v2 = vstv %s646_s17 }
 0x3b1   :  { %555 = vst [vmem:[#allocation2] sm:$0xff] %v554_v2 }
 0x3b2   :  { %670 = shalt.err (!%p667_p4)
}
 0x3b3   :  { %s671_s20 = scalar_lea.hbm %s838_s9, 128 }
 0x3b4   :  { %p672_p5 = scmp.ne.s32.totalorder %s838_s9, %s671_s20  ;;  %p675_p6 = scmp.lt.u32.totalorder %s671_s20, %s838_s9 }
 0x3b6   :  { %p677_p7 = pnand %p675_p6, %p672_p5 }
 0x3b8   :  { %680 = shalt.err (!%p677_p7)
}
 0x3b9   :  { %565 = dma.vmem_to_hbm [thread:$0]  %s563_s8, 128, %s838_s9, [#allocation3]  }
 0x3ba   :  { %681 = dma.done.wait [#allocation3], 128  }
 0x3bb   :  { %682 = vsyncadd [#allocation3], 4294967168 }
 0x3bc   :  { %569 = vsyncpa [#allocation3], 1 }

</bundles_post_ra>
